<compile_context>
chip_gen: v7x
topology: tpu7x:2x2x1
jax: 0.10.0
libtpu: 0.0.40
codegen_flags: <defaults>
</compile_context>

<pallas_src>
import jax
import jax.numpy as jnp
from jax import lax
from jax.experimental import pallas as pl
from jax.experimental.pallas import tpu as pltpu

DIM_FROM = 3
DIM_TO = 2

# Batch tile width (lanes). Must be a multiple of 128. Large tiles amortize the
# ~0.35 us per-grid-step overhead; per-step VMEM is tiny (x and out blocks pad
# to (8, TILE_B) f32 each => ~64 KiB double-buffered at 1024), which fits far
# inside the scoped-VMEM defaults on v5e (16 MiB), v6e (32 MiB) and v7x (32 MiB),
# so no vmem_limit_bytes override is needed.
DEFAULT_TILE_B = 1024


def _round_up(a: int, m: int) -> int:
    return ((a + m - 1) // m) * m


def linear2_kernel(w_ref, b_ref, x_ref, o_ref):
    """out[o, :] = sum_k W_eff[o, k] * x[k, :] + b_eff[o]

    w_ref: SMEM (DIM_TO, DIM_FROM)  collapsed weight, read as scalars
    b_ref: SMEM (DIM_TO,)           collapsed bias
    x_ref: VMEM (DIM_FROM, TILE_B)  batch on lanes (lane-dense)
    o_ref: VMEM (DIM_TO, TILE_B)

    Contraction sizes are 3 -> 2, so stay on the VPU (scalar*vector MACs);
    the binding resource here is the HBM/DMA path, not FLOPs.
    """
    x = x_ref[...].astype(jnp.float32)              # (DIM_FROM, TILE_B)
    for o in range(DIM_TO):                         # fully unrolled (2 rows)
        acc = x[0:1, :] * w_ref[o, 0]
        for k in range(1, DIM_FROM):
            acc = acc + x[k:k + 1, :] * w_ref[o, k]
        o_ref[o:o + 1, :] = (acc + b_ref[o]).astype(o_ref.dtype)


def linear2_forward(x, w1, b1, w2, b2, *, tile_b=DEFAULT_TILE_B):
    """Forward pass of Linear2.

    x:  [B, DIM_FROM]
    w1: [hidden, DIM_FROM], b1: [hidden]   (PyTorch nn.Linear conventions)
    w2: [DIM_TO, hidden],   b2: [DIM_TO]
    returns [B, DIM_TO]
    """
    B = x.shape[0]
    out_dtype = x.dtype
    hi = lax.Precision.HIGHEST

    # --- Collapse the two affine layers in the wrapper (XLA). ---
    # NOTE: this fusion is only valid because Linear2 has NO activation between
    # fc1 and fc2; remove it if an activation is ever added.
    w_eff = jnp.dot(w2, w1, precision=hi).astype(jnp.float32)          # [DIM_TO, DIM_FROM]
    b_eff = (jnp.dot(w2, b1, precision=hi) + b2).astype(jnp.float32)   # [DIM_TO]

    # --- Feature-major layout: batch on lanes. ---
    x_t = x.T.astype(jnp.float32)                                      # [DIM_FROM, B]

    # --- Pad the batch (lane) axis to a multiple of the tile width. ---
    tile = min(tile_b, _round_up(B, 128))      # multiple of 128
    b_pad = _round_up(B, tile)
    if b_pad != B:
        x_t = jnp.pad(x_t, ((0, 0), (0, b_pad - B)))

    grid = (b_pad // tile,)

    out_t = pl.pallas_call(
        linear2_kernel,
        out_shape=jax.ShapeDtypeStruct((DIM_TO, b_pad), jnp.float32),
        grid=grid,
        in_specs=[
            pl.BlockSpec(memory_space=pltpu.MemorySpace.SMEM),    # w_eff
            pl.BlockSpec(memory_space=pltpu.MemorySpace.SMEM),    # b_eff
            pl.BlockSpec((DIM_FROM, tile), lambda i: (0, i)),     # x tile
        ],
        out_specs=pl.BlockSpec((DIM_TO, tile), lambda i: (0, i)),
        compiler_params=pltpu.CompilerParams(
            # Batch tiles are independent -> shards across v7x's 2 TCs;
            # harmless no-op on v5e/v6e.
            dimension_semantics=("parallel",),
        ),
    )(w_eff, b_eff, x_t)

    # Drop padded columns, return batch-major [B, DIM_TO].
    return out_t[:, :B].T.astype(out_dtype)


if __name__ == "__main__":
    hidden = 32
    batch = 8

    key = jax.random.PRNGKey(0)
    kx, k1, k2, k3, k4 = jax.random.split(key, 5)

    # Deterministic parameter init (shapes follow nn.Linear: weight [out, in]).
    x = jax.random.normal(kx, (batch, DIM_FROM), dtype=jnp.float32)
    w1 = jax.random.normal(k1, (hidden, DIM_FROM), dtype=jnp.float32) * 0.1
    b1 = jax.random.normal(k2, (hidden,), dtype=jnp.float32) * 0.1
    w2 = jax.random.normal(k3, (DIM_TO, hidden), dtype=jnp.float32) * 0.1
    b2 = jax.random.normal(k4, (DIM_TO,), dtype=jnp.float32) * 0.1

    out = linear2_forward(x, w1, b1, w2, b2)
    jax.block_until_ready(out)

    # Plain-JAX reference of the same math (full f32 precision).
    hi = lax.Precision.HIGHEST
    h_ref = jnp.dot(x, w1.T, precision=hi) + b1
    ref = jnp.dot(h_ref, w2.T, precision=hi) + b2

    assert out.shape == (batch, DIM_TO)
    assert jnp.allclose(out, ref, atol=1e-5, rtol=1e-5)

    print("KERNEL_OK")
</pallas_src>

<mosaic_0001>
module attributes {stable_mosaic.version = 11 : i64} {
  func.func @linear2_kernel(%arg0: i32, %arg1: memref<2x3xf32, #tpu.memory_space<smem>>, %arg2: memref<2xf32, #tpu.memory_space<smem>>, %arg3: memref<3x128xf32, #tpu.memory_space<vmem>>, %arg4: memref<2x128xf32, #tpu.memory_space<vmem>>) attributes {dimension_semantics = [#tpu.dimension_semantics<parallel>], iteration_bounds = array<i64: 1>, scalar_prefetch = 0 : i64, scratch_operands = 0 : i64, tpu.core_type = #tpu.core_type<tc>, window_params = [{transform_indices = @transform_0, window_bounds = array<i64: 2, 3>}, {transform_indices = @transform_1, window_bounds = array<i64: 2>}, {transform_indices = @transform_2, window_bounds = array<i64: 3, 128>}, {transform_indices = @transform_3, window_bounds = array<i64: 2, 128>}]} {
    %c0 = arith.constant 0 : index
    %c0_0 = arith.constant 0 : index
    %0 = vector.load %arg3[%c0, %c0_0] : memref<3x128xf32, #tpu.memory_space<vmem>>, vector<3x128xf32>
    %1 = vector.extract_strided_slice %0 {offsets = [0, 0], sizes = [1, 128], strides = [1, 1]} : vector<3x128xf32> to vector<1x128xf32>
    %c0_1 = arith.constant 0 : index
    %c0_2 = arith.constant 0 : index
    %2 = memref.load %arg1[%c0_1, %c0_2] : memref<2x3xf32, #tpu.memory_space<smem>>
    %3 = vector.broadcast %2 : f32 to vector<1x128xf32>
    %4 = arith.mulf %1, %3 : vector<1x128xf32>
    %5 = vector.extract_strided_slice %0 {offsets = [1, 0], sizes = [1, 128], strides = [1, 1]} : vector<3x128xf32> to vector<1x128xf32>
    %c0_3 = arith.constant 0 : index
    %c1 = arith.constant 1 : index
    %6 = memref.load %arg1[%c0_3, %c1] : memref<2x3xf32, #tpu.memory_space<smem>>
    %7 = vector.broadcast %6 : f32 to vector<1x128xf32>
    %8 = arith.mulf %5, %7 : vector<1x128xf32>
    %9 = arith.addf %4, %8 : vector<1x128xf32>
    %10 = vector.extract_strided_slice %0 {offsets = [2, 0], sizes = [1, 128], strides = [1, 1]} : vector<3x128xf32> to vector<1x128xf32>
    %c0_4 = arith.constant 0 : index
    %c2 = arith.constant 2 : index
    %11 = memref.load %arg1[%c0_4, %c2] : memref<2x3xf32, #tpu.memory_space<smem>>
    %12 = vector.broadcast %11 : f32 to vector<1x128xf32>
    %13 = arith.mulf %10, %12 : vector<1x128xf32>
    %14 = arith.addf %9, %13 : vector<1x128xf32>
    %c0_5 = arith.constant 0 : index
    %15 = memref.load %arg2[%c0_5] : memref<2xf32, #tpu.memory_space<smem>>
    %16 = vector.broadcast %15 : f32 to vector<1x128xf32>
    %17 = arith.addf %14, %16 : vector<1x128xf32>
    %c0_6 = arith.constant 0 : index
    %c0_7 = arith.constant 0 : index
    %18 = vector.load %arg4[%c0_6, %c0_7] : memref<2x128xf32, #tpu.memory_space<vmem>>, vector<1x128xf32>
    tpu.vector_store %arg4[%c0_6, %c0_7], %17 {strides = array<i32>} : memref<2x128xf32, #tpu.memory_space<vmem>>, vector<1x128xf32>,
    %19 = vector.extract_strided_slice %0 {offsets = [0, 0], sizes = [1, 128], strides = [1, 1]} : vector<3x128xf32> to vector<1x128xf32>
    %c1_8 = arith.constant 1 : index
    %c0_9 = arith.constant 0 : index
    %20 = memref.load %arg1[%c1_8, %c0_9] : memref<2x3xf32, #tpu.memory_space<smem>>
    %21 = vector.broadcast %20 : f32 to vector<1x128xf32>
    %22 = arith.mulf %19, %21 : vector<1x128xf32>
    %23 = vector.extract_strided_slice %0 {offsets = [1, 0], sizes = [1, 128], strides = [1, 1]} : vector<3x128xf32> to vector<1x128xf32>
    %c1_10 = arith.constant 1 : index
    %c1_11 = arith.constant 1 : index
    %24 = memref.load %arg1[%c1_10, %c1_11] : memref<2x3xf32, #tpu.memory_space<smem>>
    %25 = vector.broadcast %24 : f32 to vector<1x128xf32>
    %26 = arith.mulf %23, %25 : vector<1x128xf32>
    %27 = arith.addf %22, %26 : vector<1x128xf32>
    %28 = vector.extract_strided_slice %0 {offsets = [2, 0], sizes = [1, 128], strides = [1, 1]} : vector<3x128xf32> to vector<1x128xf32>
    %c1_12 = arith.constant 1 : index
    %c2_13 = arith.constant 2 : index
    %29 = memref.load %arg1[%c1_12, %c2_13] : memref<2x3xf32, #tpu.memory_space<smem>>
    %30 = vector.broadcast %29 : f32 to vector<1x128xf32>
    %31 = arith.mulf %28, %30 : vector<1x128xf32>
    %32 = arith.addf %27, %31 : vector<1x128xf32>
    %c1_14 = arith.constant 1 : index
    %33 = memref.load %arg2[%c1_14] : memref<2xf32, #tpu.memory_space<smem>>
    %34 = vector.broadcast %33 : f32 to vector<1x128xf32>
    %35 = arith.addf %32, %34 : vector<1x128xf32>
    %c1_15 = arith.constant 1 : index
    %c0_16 = arith.constant 0 : index
    %36 = vector.load %arg4[%c1_15, %c0_16] : memref<2x128xf32, #tpu.memory_space<vmem>>, vector<1x128xf32>
    tpu.vector_store %arg4[%c1_15, %c0_16], %35 {strides = array<i32>} : memref<2x128xf32, #tpu.memory_space<vmem>>, vector<1x128xf32>,
    return
  }
  func.func @transform_0(%arg0: i32) -> (i32, i32) {
    %c0_i32 = arith.constant 0 : i32
    %c0_i32_0 = arith.constant 0 : i32
    %c0_i32_1 = arith.constant 0 : i32
    return %c0_i32, %c0_i32_0 : i32, i32
  }
  func.func @transform_1(%arg0: i32) -> i32 {
    %c0_i32 = arith.constant 0 : i32
    %c0_i32_0 = arith.constant 0 : i32
    return %c0_i32 : i32
  }
  func.func @transform_2(%arg0: i32) -> (i32, i32) {
    %c0_i32 = arith.constant 0 : i32
    %c0_i32_0 = arith.constant 0 : i32
    return %c0_i32, %arg0 : i32, i32
  }
  func.func @transform_3(%arg0: i32) -> (i32, i32) {
    %c0_i32 = arith.constant 0 : i32
    %c0_i32_0 = arith.constant 0 : i32
    return %c0_i32, %arg0 : i32, i32
  }
}

</mosaic_0001>

<bundles_post_ra>
// kernel: tpu_custom_call.1
= control target key start
LH: loop header
LB: loop body
LE: loop exit
PB: predicated region body
PF: predicated region fallthrough
CT: control target
= control target key end

     0   :  { %8 = vsyncpa [#allocation4], 0  ;;  %s209_s0 = inlined_call_operand.hbm [shape: f32[2,3], index: 0, kind: input, shape index: {}]   ;;  %s210_s1 = inlined_call_operand.vmem [shape: f32[2], index: 1, kind: input, shape index: {}]   ;;  %s211_s2 = inlined_call_operand.vmem [shape: f32[3,128], index: 2, kind: input, shape index: {}]   ;;  %s212_s3 = inlined_call_operand.hbm [shape: f32[2,128], index: 3, kind: output, shape index: {}]  }
   0x1   :  { %9 = vsyncpa [#allocation5], 0 }
   0x2   :  { %10 = vsyncpa [#allocation3], 0  ;;  %s25_s14 = sshll.u32 %s210_s1, 4  ;;  %s106_s17 = scalar_lea.hbm %s209_s0, 32  ;;  %s26_s14 = int_to_ptr.vmem [resolvable:$true] %s25_s14 }
   0x3   :  { %p107_p0 = scmp.ne.s32.totalorder %s209_s0, %s106_s17  ;;  %p110_p1 = scmp.lt.u32.totalorder %s106_s17, %s209_s0 }
   0x5   :  { %p112_p2 = pnand %p110_p1, %p107_p0 }
   0x7   :  { %115 = shalt.err (!%p112_p2)
}
   0x8   :  { %s156_s22 = smov [#allocation2]   ;;  %s116_s1 = scalar_lea.vmem %s26_s14, 16 }
   0x9   :  { %18 = dma.hbm_to_smem %s209_s0, 32, %s156_s22, [#allocation4]  }
   0xa   :  { %p117_p3 = scmp.ne.s32.totalorder %s26_s14, %s116_s1  ;;  %p121_p4 = scmp.lt.s32.totalorder %s26_s14, %s26_s14 }
   0xb   :  { %p122_p5 = scmp.lt.s32.totalorder %s116_s1, %s116_s1 }
   0xd   :  { %p123_p6 = por %p122_p5, %p121_p4 }
   0xf   :  { %p124_p7 = pnand %p123_p6, %p117_p3 }
  0x11   :  { %127 = shalt.err (!%p124_p7)
}
  0x12   :  { %s157_s25 = smov [#allocation6]  }
  0x13   :  { %28 = dma.vmem_to_smem %s26_s14, 16, %s157_s25, [#allocation5]  }
  0x14   :  { %150 = dma.done.wait [#allocation4], 32  }
  0x15   :  { %151 = vsyncadd [#allocation4], 4294967264 }
  0x16   :  { %152 = dma.done.wait [#allocation5], 16  }
  0x17   :  { %153 = vsyncadd [#allocation5], 4294967280 }
  0x18   :  { %37 = sfence }
  0x19   :  { %s39_s26 = sld [smem:[#allocation2]]  ;;  %s97_s27 = sld [smem:[#allocation2 + $0x1]]  ;;  %v38_v0 = vld [vmem:[%s211_s2] sm:$0x7] }
  0x1a   :  { %s98_s28 = sld [smem:[#allocation2 + $0x2]]  ;;  %s99_s29 = sld [smem:[#allocation2 + $0x80]] }
  0x1b   :  { %s100_s0 = sld [smem:[#allocation2 + $0x81]]  ;;  %s101_s30 = sld [smem:[#allocation2 + $0x82]] }
  0x1c   :  { %s56_s6 = sld [smem:[#allocation6]]  ;;  %s102_s7 = sld [smem:[#allocation6 + $0x1]] }
  0x1d   :  { %s158_s2 = smov [#allocation7]  }
  0x1e   :  { %s87_s8 = sshll.u32 %s158_s2, 4  ;;  %s88_s8 = int_to_ptr.vmem [resolvable:$true] %s87_s8 }
  0x1f   :  { %v40_v1 = vstv %s39_s26  ;;  %v43_v2 = vstv %s97_s27  ;;  %s128_s9 = scalar_lea.vmem %s88_s8, 32  ;;  %p133_p9 = scmp.lt.s32.totalorder %s88_s8, %s88_s8 }
  0x20   :  { %v41_v3 = vmul.f32 %v40_v1, %v38_v0  ;;  %v44_v4 = vmul.f32 %v43_v2, %v38_v0  ;;  %v50_v5 = vstv %s98_s28  ;;  %v61_v7 = vstv %s99_s29  ;;  %p129_p8 = scmp.ne.s32.totalorder %s88_s8, %s128_s9  ;;  %p134_p10 = scmp.lt.s32.totalorder %s128_s9, %s128_s9 }
  0x21   :  { %v51_v6 = vmul.f32 %v50_v5, %v38_v0  ;;  %v64_v8 = vstv %s100_s0  ;;  %v62_v10 = vmul.f32 %v61_v7, %v38_v0  ;;  %v71_v12 = vstv %s101_s30 }
  0x22   :  { %v46_v9 = vrot.slane %v44_v4, 1  ;;  %v65_v11 = vmul.f32 %v64_v8, %v38_v0  ;;  %v72_v14 = vmul.f32 %v71_v12, %v38_v0  ;;  %v57_v17 = vstv %s56_s6  ;;  %p135_p11 = por %p134_p10, %p133_p9 }
  0x23   :  { %v53_v13 = vrot.slane %v51_v6, 2  ;;  %v78_v21 = vstv %s102_s7 }
  0x24   :  { %v48_v15 = vadd.f32 %v46_v9, %v41_v3  ;;  %v67_v16 = vrot.slane %v65_v11, 1  ;;  %v74_v18 = vrot.slane %v72_v14, 2  ;;  %p136_p12 = pnand %p135_p11, %p129_p8 }
  0x26   :  { %v55_v19 = vadd.f32 %v53_v13, %v48_v15  ;;  %v69_v20 = vadd.f32 %v67_v16, %v62_v10 }
  0x28   :  { %v58_v22 = vadd.f32 %v57_v17, %v55_v19  ;;  %v76_v23 = vadd.f32 %v74_v18, %v69_v20 }
  0x2a   :  { %59 = vst [vmem:[#allocation7] sm:$0x1] %v58_v22  ;;  %v79_v24 = vadd.f32 %v78_v21, %v76_v23 }
  0x2c   :  { %80 = vst [vmem:[#allocation7 + $0x1] sm:$0x1] %v79_v24 }
  0x2d   :  { %139 = shalt.err (!%p136_p12)
}
  0x2e   :  { %s140_s12 = scalar_lea.hbm %s212_s3, 32 }
  0x2f   :  { %p141_p13 = scmp.ne.s32.totalorder %s212_s3, %s140_s12  ;;  %p144_p0 = scmp.lt.u32.totalorder %s140_s12, %s212_s3 }
  0x31   :  { %p146_p1 = pnand %p144_p0, %p141_p13 }
  0x33   :  { %149 = shalt.err (!%p146_p1)
}
  0x34   :  { %90 = dma.vmem_to_hbm [thread:$0]  %s88_s8, 32, %s212_s3, [#allocation3]  }
  0x35   :  { %154 = dma.done.wait [#allocation3], 32  }
  0x36   :  { %155 = vsyncadd [#allocation3], 4294967264 }
  0x37   :  { %94 = vsyncpa [#allocation3], 1 }
  0x38   :  { %95 = vsyncpa [#allocation4], 1 }
  0x39   :  { %96 = vsyncpa [#allocation5], 1 }

</bundles_post_ra>
